<compile_context>
chip_gen: v7x
topology: tpu7x:2x2x1
jax: 0.10.0
libtpu: 0.0.40
codegen_flags: <defaults>
</compile_context>

<pallas_src>
import math

import jax
import jax.numpy as jnp
from jax.experimental import pallas as pl
from jax.experimental.pallas import tpu as pltpu


_TARGET_STEPS = 8  # >= 2-4 pipelined steps per TensorCore on dual-TC (v7x) chips


def _per_step_vmem_budget_bytes():
    """Per-grid-step (input block + output block) byte budget.

    The BlockSpec pipeline double-buffers every block, so real scoped-VMEM use
    is ~2x this value; physical/20 keeps that inside every generation's default
    scoped limit with headroom (v5e/v6e 128 MiB -> ~6.4 MiB/step, v7x 64 MiB
    per TC -> ~3.2 MiB/step).
    """
    cap = 64 * 2**20  # assume the smallest (v7x per-TC) physical VMEM if unknown
    try:
        info = pltpu.get_tpu_info()
        cap = int(getattr(info, "vmem_capacity_bytes", cap))
    except Exception:
        pass
    return max(1 << 20, cap // 20)


def _sublane_quantum(itemsize):
    # f32 -> 8, bf16 -> 16, int8/fp8 -> 32 sublanes per (8,128)-equivalent tile.
    return {4: 8, 2: 16, 1: 32}.get(itemsize, 8)


def _plan_blocks(N, cols_in, pad_cols, itemsize):
    """Pick (Nb, Fb, budget).  Fb is None -> no column split (whole-row kernel)."""
    cols_out = cols_in + 2 * pad_cols
    q = _sublane_quantum(itemsize)
    budget = _per_step_vmem_budget_bytes()

    # --- batch blocking: biggest sublane-aligned Nb that fits the budget and
    # still leaves >= _TARGET_STEPS grid steps when N is large enough. ---
    per_row = (cols_in + cols_out) * itemsize
    nb_budget = max(1, budget // per_row)
    nb_steps = max(1, (N + _TARGET_STEPS - 1) // _TARGET_STEPS)
    nb = min(nb_budget, nb_steps)
    if nb >= N:
        nb = N
    elif nb >= q:
        nb = (nb // q) * q                      # multiple of 8/16/32 sublanes
    else:
        nb = N if N <= q else q                 # never a ragged sub-sublane block
    n_bsteps = (N + nb - 1) // nb

    # --- column split along the lane axis when batch steps alone are not enough
    # (small N / inference) or a full row per sample exceeds the VMEM budget.
    # Block boundaries must land on the pad-band edges and on 128-lane multiples.
    fb = None
    need_steps = n_bsteps < _TARGET_STEPS
    need_vmem = nb * per_row > budget
    if need_steps or need_vmem:
        g = math.gcd(pad_cols, cols_in) if pad_cols > 0 else cols_in
        if g % 128 == 0:
            want_cols = (_TARGET_STEPS + n_bsteps - 1) // n_bsteps
            divisors = [d for d in range(128, g + 1, 128) if g % d == 0]
            for cand in sorted(divisors, reverse=True):     # prefer the largest block
                col_steps = cols_out // cand
                step_bytes = 2 * nb * cand * itemsize
                if col_steps >= want_cols and step_bytes <= budget:
                    fb = cand
                    break
            if fb is None:
                fb = 128                                     # max split / min VMEM
    return nb, fb, budget


def _whole_row_kernel(C, pad, HW):
    """One grid step = (Nb, C*HW) -> (Nb, C_out*HW): zero the two pad bands,
    copy the data band exactly once.  Used when no aligned column split exists
    or the batch axis alone already provides enough pipelined steps."""
    lo, hi = pad * HW, (pad + C) * HW

    def kernel(x_ref, o_ref):
        nb = o_ref.shape[0]
        if pad > 0:
            zeros = jnp.zeros((nb, lo), o_ref.dtype)
            o_ref[:, :lo] = zeros                 # low channel-pad band
            o_ref[:, hi:] = zeros                 # high channel-pad band
        o_ref[:, lo:hi] = x_ref[...]              # data band, written once

    return kernel


def _banded_kernel(pad_blk, data_blk):
    """Column-split kernel: grid = (batch blocks, output column blocks).
    Column blocks [0, pad_blk) and [pad_blk+data_blk, ...) are pure zero
    stores; the middle ones are pure copies of the matching input block."""

    def kernel(x_ref, o_ref):
        j = pl.program_id(1)
        in_data = jnp.logical_and(j >= pad_blk, j < pad_blk + data_blk)

        @pl.when(in_data)
        def _():
            o_ref[...] = x_ref[...]

        @pl.when(jnp.logical_not(in_data))
        def _():
            o_ref[...] = jnp.zeros_like(o_ref)

    return kernel


def lambda_layer(x, planes):
    """Pallas implementation of the ResNet-20 option-A LambdaLayer shortcut.

    x: (N, C, H, W) array (NCHW, matching PyTorch); planes: residual-branch
    channel count, pad = planes // 4.
    Returns (N, C + 2*pad, ceil(H/2), ceil(W/2)), equal to
        F.pad(x[:, :, ::2, ::2], (0, 0, 0, 0, pad, pad), 'constant', 0)
    """
    N, C, H, W = x.shape
    pad = planes // 4
    H_out, W_out = (H + 1) // 2, (W + 1) // 2
    HW = H_out * W_out
    C_out = C + 2 * pad
    cols_in, pad_cols, cols_out = C * HW, pad * HW, C_out * HW
    itemsize = jnp.dtype(x.dtype).itemsize

    # 2x spatial subsample + flatten to a lane-dense (N, C*H_out*W_out) slab.
    # The reshape is free; the strided slice is the part that should be fused
    # into the producing conv in the full model (see TODO at top of file).
    xs = x[:, :, ::2, ::2].reshape(N, cols_in)

    Nb, Fb, _ = _plan_blocks(N, cols_in, pad_cols, itemsize)
    cost = pl.CostEstimate(
        flops=0,
        transcendentals=0,
        bytes_accessed=(cols_in + cols_out) * N * itemsize,
    )

    if Fb is not None:
        # Column-split path: pad-band edges are block boundaries (Fb | pad*HW
        # and Fb | C*HW), every block last-dim is a 128 multiple.
        pad_blk = pad_cols // Fb
        data_blk = cols_in // Fb
        grid = (pl.cdiv(N, Nb), cols_out // Fb)
        step_bytes = 2 * Nb * Fb * itemsize           # in block + out block
        vmem_limit = int(min(32 * 2**20, max(16 * 2**20, 3 * step_bytes)))
        out_flat = pl.pallas_call(
            _banded_kernel(pad_blk, data_blk),
            out_shape=jax.ShapeDtypeStruct((N, cols_out), x.dtype),
            grid=grid,
            in_specs=[pl.BlockSpec(
                (Nb, Fb),
                # Pad-band steps clamp to a neighbouring data block; consecutive
                # equal block indices are not re-fetched by the pipeline.
                lambda n, j: (n, jnp.clip(j - pad_blk, 0, data_blk - 1)))],
            out_specs=pl.BlockSpec((Nb, Fb), lambda n, j: (n, j)),
            compiler_params=pltpu.CompilerParams(
                dimension_semantics=("parallel", "parallel"),
                vmem_limit_bytes=vmem_limit),
            cost_estimate=cost,
        )(xs)
    else:
        # Whole-row path: one step per batch block, in (Nb, C*HW) -> out
        # (Nb, C_out*HW); last dims equal the full array dims so any shape is legal.
        grid = (pl.cdiv(N, Nb),)
        step_bytes = Nb * (cols_in + cols_out) * itemsize
        vmem_limit = int(min(32 * 2**20, max(16 * 2**20, 3 * step_bytes)))
        out_flat = pl.pallas_call(
            _whole_row_kernel(C, pad, HW),
            out_shape=jax.ShapeDtypeStruct((N, cols_out), x.dtype),
            grid=grid,
            in_specs=[pl.BlockSpec((Nb, cols_in), lambda n: (n, 0))],
            out_specs=pl.BlockSpec((Nb, cols_out), lambda n: (n, 0)),
            compiler_params=pltpu.CompilerParams(
                dimension_semantics=("parallel",),
                vmem_limit_bytes=vmem_limit),
            cost_estimate=cost,
        )(xs)

    return out_flat.reshape(N, C_out, H_out, W_out)


def _reference(x, planes):
    pad = planes // 4
    return jnp.pad(
        x[:, :, ::2, ::2],
        ((0, 0), (pad, pad), (0, 0), (0, 0)),
        mode="constant",
        constant_values=0.0,
    )


if __name__ == "__main__":
    key = jax.random.PRNGKey(0)

    # (shape, planes): exercises both the column-split and whole-row paths.
    cases = [
        ((2, 4, 16, 16), 8),      # small demo -> column-split path (4 steps)
        ((16, 16, 32, 32), 32),   # ResNet-20 layer2 downsample -> column-split, 2x4 grid
        ((64, 16, 32, 32), 32),   # large batch -> whole-row path, 8 batch steps
        ((2, 4, 7, 7), 8),        # odd spatial -> whole-row fallback (unaligned bands)
    ]

    for shape, planes in cases:
        key, sub = jax.random.split(key)
        x = jax.random.normal(sub, shape, dtype=jnp.float32)

        out = jax.block_until_ready(lambda_layer(x, planes))
        ref = _reference(x, planes)

        assert out.shape == ref.shape, (shape, out.shape, ref.shape)
        assert out.dtype == x.dtype
        assert jnp.array_equal(out, ref), f"Pallas output mismatch for {shape}"

    print("KERNEL_OK")
</pallas_src>

<mosaic_0001>
module attributes {stable_mosaic.version = 11 : i64} {
  func.func @kernel(%arg0: i32, %arg1: i32, %arg2: memref<2x128xf32, #tpu.memory_space<vmem>>, %arg3: memref<2x128xf32, #tpu.memory_space<vmem>>) attributes {dimension_semantics = [#tpu.dimension_semantics<parallel>, #tpu.dimension_semantics<parallel>], iteration_bounds = array<i64: 1, 4>, scalar_prefetch = 0 : i64, scratch_operands = 0 : i64, tpu.core_type = #tpu.core_type<tc>, window_params = [{transform_indices = @transform_0, window_bounds = array<i64: 2, 128>}, {transform_indices = @transform_1, window_bounds = array<i64: 2, 128>}]} {
    %c1_i32 = arith.constant 1 : i32
    %0 = arith.cmpi sge, %arg1, %c1_i32 : i32
    %c3_i32 = arith.constant 3 : i32
    %1 = arith.cmpi slt, %arg1, %c3_i32 : i32
    %2 = arith.andi %0, %1 : i1
    %3 = arith.extui %2 : i1 to i32
    %c0_i32 = arith.constant 0 : i32
    %4 = arith.cmpi ne, %3, %c0_i32 : i32
    scf.if %4 {
      %c0 = arith.constant 0 : index
      %c0_1 = arith.constant 0 : index
      %8 = vector.load %arg2[%c0, %c0_1] : memref<2x128xf32, #tpu.memory_space<vmem>>, vector<2x128xf32>
      %c0_2 = arith.constant 0 : index
      %c0_3 = arith.constant 0 : index
      %9 = vector.load %arg3[%c0_2, %c0_3] : memref<2x128xf32, #tpu.memory_space<vmem>>, vector<2x128xf32>
      tpu.vector_store %arg3[%c0_2, %c0_3], %8 {strides = array<i32>} : memref<2x128xf32, #tpu.memory_space<vmem>>, vector<2x128xf32>,
    } else {
    }
    %true = arith.constant true
    %5 = arith.xori %2, %true : i1
    %6 = arith.extui %5 : i1 to i32
    %c0_i32_0 = arith.constant 0 : i32
    %7 = arith.cmpi ne, %6, %c0_i32_0 : i32
    scf.if %7 {
      %cst = arith.constant 0.000000e+00 : f32
      %8 = vector.broadcast %cst : f32 to vector<2x128xf32>
      %c0 = arith.constant 0 : index
      %c0_1 = arith.constant 0 : index
      %9 = vector.load %arg3[%c0, %c0_1] : memref<2x128xf32, #tpu.memory_space<vmem>>, vector<2x128xf32>
      tpu.vector_store %arg3[%c0, %c0_1], %8 {strides = array<i32>} : memref<2x128xf32, #tpu.memory_space<vmem>>, vector<2x128xf32>,
    } else {
    }
    return
  }
  func.func @transform_0(%arg0: i32, %arg1: i32) -> (i32, i32) {
    %c1_i32 = arith.constant 1 : i32
    %0 = arith.subi %arg1, %c1_i32 : i32
    %c0_i32 = arith.constant 0 : i32
    %c1_i32_0 = arith.constant 1 : i32
    %1 = arith.maxsi %c0_i32, %0 : i32
    %2 = arith.minsi %c1_i32_0, %1 : i32
    %c0_i32_1 = arith.constant 0 : i32
    return %arg0, %2 : i32, i32
  }
  func.func @transform_1(%arg0: i32, %arg1: i32) -> (i32, i32) {
    %c0_i32 = arith.constant 0 : i32
    return %arg0, %arg1 : i32, i32
  }
}

</mosaic_0001>

<bundles_post_ra>
// kernel: tpu_custom_call.1
= control target key start
LH: loop header
LB: loop body
LE: loop exit
PB: predicated region body
PF: predicated region fallthrough
CT: control target
= control target key end

     0   :  { %6 = vsyncpa [#allocation3], 0  ;;  %s753_s0 = inlined_call_operand.hbm [shape: f32[2,256], index: 0, kind: input, shape index: {}]   ;;  %s754_s1 = inlined_call_operand.hbm [shape: f32[2,512], index: 1, kind: output, shape index: {}]  }
   0x1   :  { %8 = vsyncpa [#allocation3 + $0x1], 0 }
   0x2   :  { %9 = vsyncpa [#allocation4], 0 }
   0x3   :  { %11 = vsyncpa [#allocation4 + $0x1], 0  ;;  %s555_s6 = smov 0   ;;  %s557_s7 = smov 0  }
   0x4   :  { %s559_s8 = smov 0   ;;  %s561_s9 = smov 0  }
   0x5   :  { %s563_s10 = smov 0   ;;  %s565_s11 = smov 0  }
   0x6   :  { %s567_s12 = smov 0   ;;  %s569_s13 = smov 0  }
   0x7   :  { %s571_s14 = smov 0  }
   0x8 LB: > { %s280_s15 = sadd.s32 4294967295, %s540_s14   ;;  %s281_s16 = sadd.s32 4294967294, %s540_s14   ;;  %s540_s14 = sphi %s571_s14, %s17_s14   ;;  %s536_s13 = sphi %s569_s13, %s772_s13   ;;  %s532_s12 = sphi %s567_s12, %s771_s12   ;;  %s528_s11 = sphi %s565_s11, %s770_s11   ;;  %s524_s10 = sphi %s563_s10, %s769_s10   ;;  %s520_s9 = sphi %s561_s9, %s768_s9   ;;  %s516_s8 = sphi %s559_s8, %s767_s8   ;;  %s512_s7 = sphi %s557_s7, %s766_s7   ;;  %s508_s6 = sphi %s555_s6, %s765_s6  }
   0x9   : > { %s26_s17 = sadd.s32 1, %s536_s13  ;;  %s282_s18 = sadd.s32 4294967295, %s536_s13 }
   0xa   : > { %p27_p0 = scmp.ge.s32.totalorder %s26_s17, 4  ;;  %p34_p1 = scmp.gt.s32.totalorder %s282_s18, 0 }
   0xb   : > { %p283_p2 = scmp.lt.s32.totalorder %s282_s18, 1  ;;  %s48_s19 = sadd.s32 1, %s528_s11 }
   0xc   : > { %s774_s17 = smov (%p27_p0, %s26_s17), 0  ;;  %s776_s18 = smov (!%p34_p1, %s282_s18), 0 }
   0xd   : > { %s288_s20 = sadd.s32 4294967295, %s774_s17  ;;  %p55_p3 = scmp.ne.s32.totalorder %s528_s11, %s524_s10 }
   0xe   : > { %s778_s18 = smov (!%p283_p2, %s776_s18), 1  ;;  %p39_p4 = scmp.gt.s32.totalorder %s288_s20, 0 }
   0xf   : > { %p289_p5 = scmp.lt.s32.totalorder %s288_s20, 1  ;;  %p56_p6 = scmp.eq.s32.totalorder %s540_s14, 0 }
  0x10   : > { %p61_p7 = scmp.ne.s32.totalorder %s524_s10, %s520_s9  ;;  %s780_s20 = smov (!%p39_p4, %s288_s20), 0 }
  0x11   : > { %p610_p8 = por %p56_p6, %p55_p3  ;;  %p62_p9 = scmp.eq.s32.totalorder %s280_s15, 0 }
  0x12   : > { %s782_s20 = smov (!%p289_p5, %s780_s20), 1  ;;  %s72_s23 = ssub.s32 %s536_s13, %s774_s17 }
  0x13   : > { %p616_p10 = por %p62_p9, %p61_p7  ;;  %s44_s24 = ssub.s32 %s778_s18, %s782_s20 }
  0x14   : > { %p74_p11 = scmp.eq.s32.totalorder %s72_s23, 0  ;;  %p46_p12 = scmp.eq.s32.totalorder %s44_s24, 0 }
  0x15   : > { %s76_s25 = sadd.s32 1, %s516_s8  ;;  %p86_p13 = scmp.ne.s32.totalorder %s516_s8, %s512_s7 }
  0x16   : > { %s624_s26 = scalar_select %p74_p11, %s516_s8, %s76_s25  }
  0x17   : > { %s627_s27 = scalar_select %p46_p12, %s528_s11, %s48_s19  }
  0x18   : > { %p87_p0 = scmp.eq.s32.totalorder %s280_s15, 3  ;;  %p92_p1 = scmp.ne.s32.totalorder %s512_s7, %s508_s6 }
  0x19   : > { %p93_p2 = scmp.eq.s32.totalorder %s281_s16, 3  ;;  %p329_p5 = scmp.lt.s32.totalorder %s540_s14, 4 }
  0x1a   : > { %p637_p3 = por %p87_p0, %p86_p13  ;;  %s113_s30 = sand.u32 1, %s528_s11  }
  0x1b   : > { %p641_p4 = por %p93_p2, %p92_p1  ;;  %s303_s2 = sshll.u32 %s778_s18, 5 }
  0x1c   : > { %s758_s28 = scalar_select %p637_p3, 1, 0 }
  0x1d   : > { %s759_s29 = scalar_select %p641_p4, 1, 0 }
  0x1e   : > { %s296_s3 = sshll.u32 %s113_s30, 1  ;;  %s650_s9 = scalar_lea.hbm %s753_s0, %s303_s2 }
  0x1f   : > { %s117_s15 = scalar_lea.vmem [#allocation2], %s296_s3  ;;  %p654_p6 = pnand %p329_p5, %p610_p8 }
  0x20   : > { %s131_s16 = sshll.u32 %s117_s15, 4  ;;  %s114_s18 = scalar_lea.sflag [#allocation3], %s113_s30  ;;  %s658_s16 = int_to_ptr.vmem [resolvable:$true] %s131_s16 }
  0x21   : > { %s404_s20 = scalar_lea.hbm %s650_s9, 32  ;;  %p406_p12 = pneg %p654_p6 }
  0x22   : > { %p405_p11 = scmp.ne.s32.totalorder %s650_s9, %s404_s20  ;;  %s409_s24 = scalar_lea.hbm %s753_s0, 64 }
  0x23   : > { %p410_p8 = scmp.lt.u32.totalorder %s650_s9, %s753_s0  ;;  %p411_p1 = scmp.lt.u32.totalorder %s409_s24, %s404_s20 }
  0x24   : > { %p407_p13 = pnand %p406_p12, %p405_p11  ;;  %p413_p5 = scmp.lt.u32.totalorder %s404_s20, %s650_s9 }
  0x25   : > { %p412_p2 = por %p411_p1, %p410_p8 }
  0x26   : > { %p408_p0 = pneg %p407_p13 }
  0x27   : > { %p414_p7 = por %p413_p5, %p412_p2 }
  0x29   : > { %p415_p9 = pnand %p414_p7, %p408_p0 }
  0x2b   : > { %418 = shalt.err (!%p415_p9)
}
  0x2c   : > { %s419_s30 = scalar_lea.vmem %s658_s16, 32  ;;  %s542_s3 = smov [#allocation2]  }
  0x2d   : > { %p420_p11 = scmp.ne.s32.totalorder %s658_s16, %s419_s30  ;;  %s424_s4 = sshll.u32 %s542_s3, 4  ;;  %s425_s4 = int_to_ptr.vmem [resolvable:$false] %s424_s4 }
  0x2e   : > { %s426_s5 = scalar_lea.vmem %s425_s4, 64  ;;  %p427_p3 = scmp.lt.s32.totalorder %s658_s16, %s425_s4 }
  0x2f   : > { %p422_p13 = pnand %p420_p11, %p406_p12  ;;  %p428_p8 = scmp.lt.s32.totalorder %s426_s5, %s419_s30 }
  0x31   : > { %p423_p4 = pneg %p422_p13  ;;  %p429_p1 = por %p428_p8, %p427_p3 }
  0x33   : > { %p430_p2 = pnand %p429_p1, %p423_p4 }
  0x35   : > { %433 = shalt.err (!%p430_p2)
}
  0x36   : > { %324 = dma.hbm_to_vmem [thread:$0]  (!%p654_p6), %s650_s9, 32, %s658_s16, %s114_s18  }
  0x37   : > { %p761_p7 = scmp.lt.s32.totalorder %s540_s14, 5  ;;  %p762_p9 = scmp.ge.s32.totalorder %s540_s14, 1 }
  0x39   : > { %p137_p12 = pnand %p762_p9, %p761_p7 }
  0x3a   : > { %s142_s15 = sand.u32 (!%p137_p12), 1, %s524_s10  }
  0x3b   : > { %140 = sbr.rel (%p137_p12) target bundleno = 111 (0x6f), region = 24  ;;  %s305_s20 = sshll.u32 (!%p137_p12), %s142_s15, 1 }
  0x3c   : > { %s143_s21 = scalar_lea.sflag (!%p137_p12), [#allocation3], %s142_s15  ;;  %s146_s23 = scalar_lea.vmem (!%p137_p12), [#allocation2], %s305_s20 }
  0x42   : > { %499 = dma.done.wait (%p616_p10), %s143_s21, 32  }
  0x43   : > { %501 = vsyncadd (%p616_p10), %s143_s21, 4294967264  ;;  %s162_s19 = sand.u32 1, %s512_s7   ;;  %p170_p3 = scmp.ge.s32.totalorder %s532_s12, 1 }
  0x44   : > { %s306_s9 = sshll.u32 %s162_s19, 1  ;;  %p171_p4 = scmp.lt.s32.totalorder %s532_s12, 3 }
  0x45   : > { %s164_s16 = scalar_lea.vmem [#allocation5], %s306_s9 }
  0x46   : > { %p172_p6 = pnand %p171_p4, %p170_p3 }
  0x47   : > { %v176_v0 = vld [vmem:[%s146_s23] sm:$0x3] (!%p172_p6) }
  0x48   : > { %175 = sbr.rel (%p172_p6) target bundleno = 79 (0x4f), region = 32  ;;  %177 = vst [vmem:[%s164_s16] sm:$0x3] (!%p172_p6), %v176_v0 }
  0x4f PF: > { %180 = sbr.rel (!%p172_p6) target bundleno = 86 (0x56), region = 36  ;;  %v543_v1 = vmov (%p172_p6), 0.0  }
  0x50   : > { %181 = vst [vmem:[%s164_s16] sm:$0x3] (%p172_p6), %v543_v1 }
  0x56 PF: > { %s308_s22 = sshll.u32 %s532_s12, 5  ;;  %s198_s2 = sshll.u32 %s164_s16, 4  ;;  %s199_s2 = int_to_ptr.vmem [resolvable:$true] %s198_s2 }
  0x57   : > { %s703_s25 = scalar_lea.hbm %s754_s1, %s308_s22  ;;  %s183_s30 = scalar_lea.sflag [#allocation4], %s162_s19 }
  0x58   : > { %s434_s3 = scalar_lea.vmem %s199_s2, 32  ;;  %p763_p0 = scmp.ne.s32.totalorder %s758_s28, 0 }
  0x59   : > { %p435_p10 = scmp.ne.s32.totalorder %s199_s2, %s434_s3  ;;  %s544_s4 = smov [#allocation5]  }
  0x5a   : > { %s438_s5 = sshll.u32 %s544_s4, 4  ;;  %s439_s5 = int_to_ptr.vmem [resolvable:$false] %s438_s5 }
  0x5b   : > { %p436_p5 = pnand %p435_p10, %p763_p0  ;;  %s440_s15 = scalar_lea.vmem %s439_s5, 64 }
  0x5c   : > { %p441_p13 = scmp.lt.s32.totalorder %s199_s2, %s439_s5  ;;  %p442_p8 = scmp.lt.s32.totalorder %s440_s15, %s434_s3 }
  0x5d   : > { %p437_p11 = pneg %p436_p5 }
  0x5e   : > { %p443_p1 = por %p442_p8, %p441_p13 }
  0x60   : > { %p444_p2 = pnand %p443_p1, %p437_p11 }
  0x62   : > { %447 = shalt.err (!%p444_p2)
}
  0x63   : > { %s448_s12 = scalar_lea.hbm %s703_s25, 32  ;;  %s452_s23 = scalar_lea.hbm %s754_s1, 128 }
  0x64   : > { %p449_p7 = scmp.ne.s32.totalorder %s703_s25, %s448_s12  ;;  %p453_p3 = scmp.lt.u32.totalorder %s703_s25, %s754_s1 }
  0x65   : > { %p454_p4 = scmp.lt.u32.totalorder %s452_s23, %s448_s12  ;;  %p456_p10 = scmp.lt.u32.totalorder %s448_s12, %s703_s25 }
  0x66   : > { %p450_p9 = pnand %p449_p7, %p763_p0 }
  0x67   : > { %p455_p6 = por %p454_p4, %p453_p3 }
  0x68   : > { %p451_p12 = pneg %p450_p9 }
  0x69   : > { %p457_p5 = por %p456_p10, %p455_p6 }
  0x6b   : > { %p458_p11 = pnand %p457_p5, %p451_p12 }
  0x6d   : > { %461 = shalt.err (!%p458_p11)
}
  0x6e   : > { %319 = dma.vmem_to_hbm [thread:$0]  (%p763_p0), %s199_s2, 32, %s703_s25, %s183_s30  }
  0x6f PF: > { %p330_p13 = scmp.ge.s32.totalorder %s540_s14, 2  ;;  %s210_s16 = sand.u32 1, %s508_s6  }
  0x70   : > { %p764_p8 = scmp.ne.s32.totalorder %s759_s29, 0  ;;  %s211_s22 = scalar_lea.sflag [#allocation4], %s210_s16 }
  0x72   : > { %p326_p1 = pnand %p330_p13, %p764_p8 }
  0x74   : > { %503 = dma.done.wait (!%p326_p1), %s211_s22, 32  }
  0x75   : > { %505 = vsyncadd (!%p326_p1), %s211_s22, 4294967264  ;;  %s17_s14 = sadd.s32 1, %s540_s14   ;;  %s765_s6 = smov %s512_s7 }
  0x76   : > { %p14_p2 = scmp.ge.s32.totalorder %s17_s14, 6   ;;  %s766_s7 = smov %s516_s8 }
  0x77   : > { %s767_s8 = smov %s624_s26  ;;  %s768_s9 = smov %s524_s10 }
  0x78   : > { %s769_s10 = smov %s528_s11  ;;  %s770_s11 = smov %s627_s27 }
  0x79   : > { %s771_s12 = smov %s536_s13  ;;  %s772_s13 = smov %s774_s17 }
  0x7a   :  { %16 = sbr.rel (!%p14_p2) target bundleno = 8 (0x8), region = 77 }
  0x81   :  { %216 = vsyncpa [#allocation3], 1 }
  0x82   :  { %218 = vsyncpa [#allocation3 + $0x1], 1 }
  0x83   :  { %219 = vsyncpa [#allocation4], 1 }
  0x84   :  { %221 = vsyncpa [#allocation4 + $0x1], 1 }

</bundles_post_ra>
